<compile_context>
chip_gen: v5e
topology: v5e:2x2
jax: 0.10.0
libtpu: 0.0.40
codegen_flags: <defaults>
</compile_context>

<pallas_src>
import functools

import jax
import jax.numpy as jnp
from jax.experimental import pallas as pl
from jax.experimental.pallas import tpu as pltpu

_NEG_PAD = float(-(2 ** 32) + 1)
_TARGET_SEQ_BLOCK_BYTES = 2 << 20       # ~2 MiB sequence slab (wire bytes) per step
_VMEM_LIMIT_BYTES = 32 * 1024 * 1024    # safe scoped-VMEM budget on v5e/v6e/v7x


def _simple_attention_kernel(len_ref, q_ref, seq_ref, o_ref, m_sc, l_sc, acc_sc):
    # len_ref : VMEM (BB, 1) int32
    # q_ref   : VMEM (BB, D)
    # seq_ref : VMEM (BB, TT, D)   (wire dtype)
    # o_ref   : VMEM (BB, D)       resident across the T axis
    # m_sc/l_sc : VMEM (BB, 1) f32 online-softmax stats
    # acc_sc    : VMEM (BB, D) f32 accumulator
    k = pl.program_id(1)
    nt = pl.num_programs(1)

    @pl.when(k == 0)
    def _init():
        m_sc[...] = jnp.full_like(m_sc, -jnp.inf)
        l_sc[...] = jnp.zeros_like(l_sc)
        acc_sc[...] = jnp.zeros_like(acc_sc)

    seq = seq_ref[...]                                  # (BB, TT, D), wire dtype
    q = q_ref[...].astype(seq.dtype)                    # (BB, D)
    lengths = len_ref[...]                              # (BB, 1) int32
    bb, tt, _ = seq.shape

    # attn[b, t] = sum_d seq[b,t,d] * q[b,d]  -- batched (1,D)x(T,D)^T on the MXU
    attn = jnp.einsum("bqd,btd->bqt", q[:, None, :], seq,
                      preferred_element_type=jnp.float32)[:, 0, :]   # (BB, TT)

    # mask positions >= sequence_length[b] (global position = k*TT + local)
    pos = k * tt + jax.lax.broadcasted_iota(jnp.int32, (bb, tt), 1)
    scores = jnp.where(pos < lengths, attn, jnp.float32(_NEG_PAD))

    # online softmax update
    m_prev = m_sc[...]
    m_new = jnp.maximum(m_prev, jnp.max(scores, axis=-1, keepdims=True))  # (BB, 1)
    alpha = jnp.exp(m_prev - m_new)
    p = jnp.exp(scores - m_new)                                           # (BB, TT)

    l_sc[...] = alpha * l_sc[...] + jnp.sum(p, axis=-1, keepdims=True)

    # out contribution = (1,TT) @ (TT,D) batched matmul on the MXU
    pv = jnp.einsum("bqt,btd->bqd", p.astype(seq.dtype)[:, None, :], seq,
                    preferred_element_type=jnp.float32)[:, 0, :]          # (BB, D)
    acc_sc[...] = alpha * acc_sc[...] + pv
    m_sc[...] = m_new

    @pl.when(k == nt - 1)
    def _finalize():
        # exact normalization (cheap on a (BB, D) tile; keeps numerics tight)
        o_ref[...] = (acc_sc[...] / l_sc[...]).astype(o_ref.dtype)


def _pick_blocks(batch, seq_len, dim, wire_itemsize):
    """Pick (batch rows, timesteps) per grid step.

    Sizing uses the real on-chip footprint: D padded to 128 lanes, wire dtype,
    x2 for the double-buffered sequence input."""
    d_pad = max(128, -(-dim // 128) * 128)
    bb = batch if batch <= 64 else 64          # bb==B (full dim) or multiple of 8
    per_row_bytes = bb * d_pad * wire_itemsize
    tt = _TARGET_SEQ_BLOCK_BYTES // max(1, per_row_bytes)
    if tt >= seq_len:
        tt = seq_len                           # single T block == full dim (legal)
    else:
        tt = max(8, (tt // 8) * 8)             # sublane-aligned T tile
    return bb, tt


@functools.partial(jax.jit, static_argnames=("max_seq_length", "wire_dtype"))
def simple_attention(query, sequence, sequence_length, max_seq_length=0,
                     wire_dtype=None):
    """Pallas-backed SimpleAttention forward.

    query:            [B, D]
    sequence:         [B, T, D]
    sequence_length:  [B] integer lengths
    wire_dtype:       optional dtype (e.g. jnp.bfloat16) for HBM traffic of
                      query/sequence; MXU accumulation stays f32.  None keeps
                      the input dtype (bit-faithful to the f32 reference).
    """
    if max_seq_length > 0:
        sequence_length = jnp.minimum(sequence_length, max_seq_length)
        sequence = sequence[:, :max_seq_length, :]

    B, T, D = sequence.shape
    out_dtype = query.dtype

    if wire_dtype is not None:
        sequence = sequence.astype(wire_dtype)
        query = query.astype(wire_dtype)

    # Clamp lengths to T so padded T positions can never be unmasked.
    lengths = jnp.minimum(sequence_length.astype(jnp.int32), T).reshape(B, 1)

    seq_itemsize = jnp.dtype(sequence.dtype).itemsize
    bb, tt = _pick_blocks(B, T, D, seq_itemsize)

    # pad batch to a multiple of bb
    num_b_blocks = -(-B // bb)
    b_pad = num_b_blocks * bb
    if b_pad != B:
        pad = b_pad - B
        query = jnp.pad(query, ((0, pad), (0, 0)))
        sequence = jnp.pad(sequence, ((0, pad), (0, 0), (0, 0)))
        lengths = jnp.pad(lengths, ((0, pad), (0, 0)))     # len 0 -> sliced off below

    # pad T to a multiple of tt (padded positions are masked: pos >= T >= length)
    num_t_blocks = -(-T // tt)
    t_pad = num_t_blocks * tt
    if t_pad != T:
        sequence = jnp.pad(sequence, ((0, 0), (0, t_pad - T), (0, 0)))

    # Advisory cost hint for XLA scheduling around this mem-bound custom call.
    bytes_accessed = (b_pad * t_pad * D * seq_itemsize
                      + b_pad * D * jnp.dtype(query.dtype).itemsize
                      + b_pad * D * jnp.dtype(out_dtype).itemsize
                      + 4 * b_pad)
    cost = pl.CostEstimate(
        flops=4 * b_pad * t_pad * D,
        transcendentals=2 * b_pad * t_pad,
        bytes_accessed=int(bytes_accessed),
    )

    grid_spec = pltpu.PrefetchScalarGridSpec(
        num_scalar_prefetch=0,
        grid=(num_b_blocks, num_t_blocks),
        in_specs=[
            pl.BlockSpec((bb, 1), lambda i, k: (i, 0)),         # lengths
            pl.BlockSpec((bb, D), lambda i, k: (i, 0)),         # query
            pl.BlockSpec((bb, tt, D), lambda i, k: (i, k, 0)),  # sequence
        ],
        out_specs=pl.BlockSpec((bb, D), lambda i, k: (i, 0)),   # resident across k
        scratch_shapes=[
            pltpu.VMEM((bb, 1), jnp.float32),   # m (running max)
            pltpu.VMEM((bb, 1), jnp.float32),   # l (running denom)
            pltpu.VMEM((bb, D), jnp.float32),   # acc (running numerator)
        ],
    )

    out = pl.pallas_call(
        _simple_attention_kernel,
        out_shape=jax.ShapeDtypeStruct((b_pad, D), out_dtype),
        grid_spec=grid_spec,
        compiler_params=pltpu.CompilerParams(
            dimension_semantics=("parallel", "arbitrary"),
            vmem_limit_bytes=_VMEM_LIMIT_BYTES,
        ),
        cost_estimate=cost,
    )(lengths, query, sequence)

    return out[:B] if b_pad != B else out


def _reference(query, sequence, sequence_length, max_seq_length=0):
    """Pure-JAX reference mirroring the PyTorch forward."""
    if max_seq_length > 0:
        sequence_length = jnp.minimum(sequence_length, max_seq_length)
        sequence = sequence[:, :max_seq_length, :]
    T = sequence.shape[1]
    mask = jnp.arange(T)[None, :] < sequence_length[:, None]
    attn = jnp.einsum("btd,bd->bt", sequence, query)
    scores = jnp.where(mask, attn, _NEG_PAD)
    scores = jax.nn.softmax(scores, axis=-1)
    return jnp.einsum("bt,btd->bd", scores, sequence)


if __name__ == "__main__":
    # Deterministic parameters / inputs. sequence_dim = query_dim = 32.
    B, T, D = 2, 8, 32
    key = jax.random.PRNGKey(0)
    kq, ks = jax.random.split(key)
    query = jax.random.normal(kq, (B, D), dtype=jnp.float32)
    sequence = jax.random.normal(ks, (B, T, D), dtype=jnp.float32)
    sequence_length = jnp.array([5, 8], dtype=jnp.int32)

    out = simple_attention(query, sequence, sequence_length, max_seq_length=0)
    out = jax.block_until_ready(out)

    ref = _reference(query, sequence, sequence_length, max_seq_length=0)
    assert out.shape == (B, D)
    # f32 wire + f32 MXU accumulation + exact divide -> tight tolerance.
    assert jnp.allclose(out, ref, atol=1e-5, rtol=1e-5), "mismatch vs reference"

    print("KERNEL_OK")
</pallas_src>

<mosaic_0001>
module attributes {stable_mosaic.version = 11 : i64} {
  func.func @_simple_attention_kernel(%arg0: i32, %arg1: i32, %arg2: memref<2x1xi32, #tpu.memory_space<vmem>>, %arg3: memref<2x32xf32, #tpu.memory_space<vmem>>, %arg4: memref<2x8x32xf32, #tpu.memory_space<vmem>>, %arg5: memref<2x32xf32, #tpu.memory_space<vmem>>, %arg6: memref<2x1xf32, #tpu.memory_space<vmem>>, %arg7: memref<2x1xf32, #tpu.memory_space<vmem>>, %arg8: memref<2x32xf32, #tpu.memory_space<vmem>>) attributes {dimension_semantics = [#tpu.dimension_semantics<parallel>, #tpu.dimension_semantics<arbitrary>], iteration_bounds = array<i64: 1, 1>, scalar_prefetch = 0 : i64, scratch_operands = 3 : i64, tpu.core_type = #tpu.core_type<tc>, window_params = [{transform_indices = @transform_0, window_bounds = array<i64: 2, 1>}, {transform_indices = @transform_1, window_bounds = array<i64: 2, 32>}, {transform_indices = @transform_2, window_bounds = array<i64: 2, 8, 32>}, {transform_indices = @transform_3, window_bounds = array<i64: 2, 32>}]} {
    %c0_i32 = arith.constant 0 : i32
    %0 = arith.cmpi eq, %arg1, %c0_i32 : i32
    %1 = arith.extui %0 : i1 to i32
    %c0_i32_0 = arith.constant 0 : i32
    %2 = arith.cmpi ne, %1, %c0_i32_0 : i32
    scf.if %2 {
      %cst_25 = arith.constant 0xFF800000 : f32
      %44 = vector.broadcast %cst_25 : f32 to vector<2x1xf32>
      %c0_26 = arith.constant 0 : index
      %c0_27 = arith.constant 0 : index
      %45 = vector.load %arg6[%c0_26, %c0_27] : memref<2x1xf32, #tpu.memory_space<vmem>>, vector<2x1xf32>
      tpu.vector_store %arg6[%c0_26, %c0_27], %44 {strides = array<i32>} : memref<2x1xf32, #tpu.memory_space<vmem>>, vector<2x1xf32>,
      %cst_28 = arith.constant 0.000000e+00 : f32
      %46 = vector.broadcast %cst_28 : f32 to vector<2x1xf32>
      %c0_29 = arith.constant 0 : index
      %c0_30 = arith.constant 0 : index
      %47 = vector.load %arg7[%c0_29, %c0_30] : memref<2x1xf32, #tpu.memory_space<vmem>>, vector<2x1xf32>
      tpu.vector_store %arg7[%c0_29, %c0_30], %46 {strides = array<i32>} : memref<2x1xf32, #tpu.memory_space<vmem>>, vector<2x1xf32>,
      %cst_31 = arith.constant 0.000000e+00 : f32
      %48 = vector.broadcast %cst_31 : f32 to vector<2x32xf32>
      %c0_32 = arith.constant 0 : index
      %c0_33 = arith.constant 0 : index
      %49 = vector.load %arg8[%c0_32, %c0_33] : memref<2x32xf32, #tpu.memory_space<vmem>>, vector<2x32xf32>
      tpu.vector_store %arg8[%c0_32, %c0_33], %48 {strides = array<i32>} : memref<2x32xf32, #tpu.memory_space<vmem>>, vector<2x32xf32>,
    } else {
    }
    %c0 = arith.constant 0 : index
    %c0_1 = arith.constant 0 : index
    %c0_2 = arith.constant 0 : index
    %3 = vector.load %arg4[%c0, %c0_1, %c0_2] : memref<2x8x32xf32, #tpu.memory_space<vmem>>, vector<2x8x32xf32>
    %c0_3 = arith.constant 0 : index
    %c0_4 = arith.constant 0 : index
    %4 = vector.load %arg3[%c0_3, %c0_4] : memref<2x32xf32, #tpu.memory_space<vmem>>, vector<2x32xf32>
    %c0_5 = arith.constant 0 : index
    %c0_6 = arith.constant 0 : index
    %5 = vector.load %arg2[%c0_5, %c0_6] : memref<2x1xi32, #tpu.memory_space<vmem>>, vector<2x1xi32>
    %6 = vector.shape_cast %4 : vector<2x32xf32> to vector<2x1x32xf32>
    "tpu.trace_start"() <{level = 10 : i32, message = "bqd,btd->bqt"}> : () -> ()
    %cst = arith.constant dense<0.000000e+00> : vector<2x1x8xf32>
    %7 = tpu.matmul %6, %3, %cst {dimension_numbers = #tpu.dot_dimension_numbers<[2], [2], [1], [1], [0, 0, 0, 1, 1, 1], [0], [0]>} : vector<2x1x32xf32>, vector<2x8x32xf32>, vector<2x1x8xf32> -> vector<2x1x8xf32>
    "tpu.trace_stop"() : () -> ()
    %8 = vector.shape_cast %7 : vector<2x1x8xf32> to vector<2x8xf32>
    %c8_i32 = arith.constant 8 : i32
    %9 = arith.muli %arg1, %c8_i32 : i32
    %10 = tpu.iota {dimensions = array<i32: 1>} : vector<2x8xi32>
    %11 = vector.broadcast %9 : i32 to vector<2x8xi32>
    %12 = arith.addi %11, %10 : vector<2x8xi32>
    %13 = vector.broadcast %5 : vector<2x1xi32> to vector<2x8xi32>
    %14 = arith.cmpi slt, %12, %13 : vector<2x8xi32>
    %cst_7 = arith.constant -4.2949673E+9 : f32
    %15 = vector.broadcast %cst_7 : f32 to vector<2x8xf32>
    %16 = arith.select %14, %8, %15 : vector<2x8xi1>, vector<2x8xf32>
    %c0_8 = arith.constant 0 : index
    %c0_9 = arith.constant 0 : index
    %17 = vector.load %arg6[%c0_8, %c0_9] : memref<2x1xf32, #tpu.memory_space<vmem>>, vector<2x1xf32>
    %cst_10 = arith.constant dense<0xFF800000> : vector<2xf32>
    %18 = vector.multi_reduction <maximumf>, %16, %cst_10 [1] : vector<2x8xf32> to vector<2xf32>
    %19 = vector.shape_cast %18 : vector<2xf32> to vector<2x1xf32>
    %20 = arith.maximumf %17, %19 : vector<2x1xf32>
    %21 = arith.subf %17, %20 : vector<2x1xf32>
    %22 = math.exp %21 : vector<2x1xf32>
    %23 = vector.broadcast %20 : vector<2x1xf32> to vector<2x8xf32>
    %24 = arith.subf %16, %23 : vector<2x8xf32>
    %25 = math.exp %24 : vector<2x8xf32>
    %c0_11 = arith.constant 0 : index
    %c0_12 = arith.constant 0 : index
    %26 = vector.load %arg7[%c0_11, %c0_12] : memref<2x1xf32, #tpu.memory_space<vmem>>, vector<2x1xf32>
    %27 = arith.mulf %22, %26 : vector<2x1xf32>
    %cst_13 = arith.constant dense<0.000000e+00> : vector<2xf32>
    %28 = vector.multi_reduction <add>, %25, %cst_13 [1] : vector<2x8xf32> to vector<2xf32>
    %29 = vector.shape_cast %28 : vector<2xf32> to vector<2x1xf32>
    %30 = arith.addf %27, %29 : vector<2x1xf32>
    %c0_14 = arith.constant 0 : index
    %c0_15 = arith.constant 0 : index
    %31 = vector.load %arg7[%c0_14, %c0_15] : memref<2x1xf32, #tpu.memory_space<vmem>>, vector<2x1xf32>
    tpu.vector_store %arg7[%c0_14, %c0_15], %30 {strides = array<i32>} : memref<2x1xf32, #tpu.memory_space<vmem>>, vector<2x1xf32>,
    %32 = vector.shape_cast %25 : vector<2x8xf32> to vector<2x1x8xf32>
    "tpu.trace_start"() <{level = 10 : i32, message = "bqt,btd->bqd"}> : () -> ()
    %cst_16 = arith.constant dense<0.000000e+00> : vector<2x1x32xf32>
    %33 = tpu.matmul %32, %3, %cst_16 {dimension_numbers = #tpu.dot_dimension_numbers<[2], [1], [1], [2], [0, 0, 0, 1, 1, 2], [0], [0]>} : vector<2x1x8xf32>, vector<2x8x32xf32>, vector<2x1x32xf32> -> vector<2x1x32xf32>
    "tpu.trace_stop"() : () -> ()
    %34 = vector.shape_cast %33 : vector<2x1x32xf32> to vector<2x32xf32>
    %c0_17 = arith.constant 0 : index
    %c0_18 = arith.constant 0 : index
    %35 = vector.load %arg8[%c0_17, %c0_18] : memref<2x32xf32, #tpu.memory_space<vmem>>, vector<2x32xf32>
    %36 = vector.broadcast %22 : vector<2x1xf32> to vector<2x32xf32>
    %37 = arith.mulf %36, %35 : vector<2x32xf32>
    %38 = arith.addf %37, %34 : vector<2x32xf32>
    %c0_19 = arith.constant 0 : index
    %c0_20 = arith.constant 0 : index
    %39 = vector.load %arg8[%c0_19, %c0_20] : memref<2x32xf32, #tpu.memory_space<vmem>>, vector<2x32xf32>
    tpu.vector_store %arg8[%c0_19, %c0_20], %38 {strides = array<i32>} : memref<2x32xf32, #tpu.memory_space<vmem>>, vector<2x32xf32>,
    %c0_21 = arith.constant 0 : index
    %c0_22 = arith.constant 0 : index
    %40 = vector.load %arg6[%c0_21, %c0_22] : memref<2x1xf32, #tpu.memory_space<vmem>>, vector<2x1xf32>
    tpu.vector_store %arg6[%c0_21, %c0_22], %20 {strides = array<i32>} : memref<2x1xf32, #tpu.memory_space<vmem>>, vector<2x1xf32>,
    %c0_i32_23 = arith.constant 0 : i32
    %41 = arith.cmpi eq, %arg1, %c0_i32_23 : i32
    %42 = arith.extui %41 : i1 to i32
    %c0_i32_24 = arith.constant 0 : i32
    %43 = arith.cmpi ne, %42, %c0_i32_24 : i32
    scf.if %43 {
      %c0_25 = arith.constant 0 : index
      %c0_26 = arith.constant 0 : index
      %44 = vector.load %arg8[%c0_25, %c0_26] : memref<2x32xf32, #tpu.memory_space<vmem>>, vector<2x32xf32>
      %c0_27 = arith.constant 0 : index
      %c0_28 = arith.constant 0 : index
      %45 = vector.load %arg7[%c0_27, %c0_28] : memref<2x1xf32, #tpu.memory_space<vmem>>, vector<2x1xf32>
      %46 = vector.broadcast %45 : vector<2x1xf32> to vector<2x32xf32>
      %47 = arith.divf %44, %46 : vector<2x32xf32>
      %c0_29 = arith.constant 0 : index
      %c0_30 = arith.constant 0 : index
      %48 = vector.load %arg5[%c0_29, %c0_30] : memref<2x32xf32, #tpu.memory_space<vmem>>, vector<2x32xf32>
      tpu.vector_store %arg5[%c0_29, %c0_30], %47 {strides = array<i32>} : memref<2x32xf32, #tpu.memory_space<vmem>>, vector<2x32xf32>,
    } else {
    }
    return
  }
  func.func @transform_0(%arg0: i32, %arg1: i32) -> (i32, i32) {
    %c0_i32 = arith.constant 0 : i32
    %c0_i32_0 = arith.constant 0 : i32
    return %arg0, %c0_i32 : i32, i32
  }
  func.func @transform_1(%arg0: i32, %arg1: i32) -> (i32, i32) {
    %c0_i32 = arith.constant 0 : i32
    %c0_i32_0 = arith.constant 0 : i32
    return %arg0, %c0_i32 : i32, i32
  }
  func.func @transform_2(%arg0: i32, %arg1: i32) -> (i32, i32, i32) {
    %c0_i32 = arith.constant 0 : i32
    %c0_i32_0 = arith.constant 0 : i32
    return %arg0, %arg1, %c0_i32 : i32, i32, i32
  }
  func.func @transform_3(%arg0: i32, %arg1: i32) -> (i32, i32) {
    %c0_i32 = arith.constant 0 : i32
    %c0_i32_0 = arith.constant 0 : i32
    return %arg0, %c0_i32 : i32, i32
  }
}

</mosaic_0001>

<bundles_post_ra>
// kernel: simple_attention.1
= control target key start
LH: loop header
LB: loop body
LE: loop exit
PB: predicated region body
PF: predicated region fallthrough
CT: control target
= control target key end

     0   :  { %8 = vsyncpa [#allocation6], 0  ;;  %s368_s0 = inlined_call_operand.vmem [shape: s32[2,1], index: 0, kind: input, shape index: {}]   ;;  %s369_s1 = inlined_call_operand.vmem [shape: f32[2,32], index: 1, kind: input, shape index: {}]   ;;  %s370_s2 = inlined_call_operand.hbm [shape: f32[2,8,32], index: 2, kind: input, shape index: {}]   ;;  %s371_s3 = inlined_call_operand.hbm [shape: f32[2,32], index: 3, kind: output, shape index: {}]  }
   0x1   :  { %9 = vsyncpa [#allocation7], 0  ;;  %s18_s14 = sshll.u32 %s370_s2, 4  ;;  %s318_s15 = smov [#allocation5]   ;;  %s19_s14 = int_to_ptr.hbm [resolvable:$true] %s18_s14 }
   0x2   :  { %s20_s16 = sshll.u32 %s318_s15, 4  ;;  %s319_s17 = smov 128   ;;  %s21_s16 = int_to_ptr.vmem [resolvable:$true] %s20_s16 }
   0x3   :  { %s320_s18 = smov 8  }
   0x4   :  { %26 = dma.hbm_to_vmem [thread:$0]  %s19_s14, 256, %s21_s16, [#allocation6], %s319_s17, %s319_s17, %s320_s18  }
   0x5   :  { %314 = dma.done.wait [#allocation6], 256  }
   0x6   :  { %315 = vsyncadd [#allocation6], 4294967040  ;;  %v321_v0 = vmov 0   ;;  %vm46_vm0 = vcmask 261120   ;;  %v41_v1 = vld [vmem:[#allocation5 + $0x8] sm:$0xff]  ;;  %v40_v2 = vld [vmem:[#allocation5] sm:$0xff]  ;;  %v98_v7 = vlaneseq }
   0x7   :  { %257 = vset.pattern.permute.xlu0 %v321_v0  ;;  %258 = vset.pattern.permute.xlu1 %v321_v0  ;;  %v42_v3 = vld [vmem:[%s369_s1] sm:$0x3]  ;;  %vm35_vm1 = vcmask 1024   ;;  %v322_v6 = vmov -inf   ;;  %vm109_vm2 = vcmask 1041409   ;;  %vm114_vm4 = vcmask 58368  }
   0x8   :  { %259 = vset.pattern.permute.xlu2 %v321_v0  ;;  %246 = vmatpush.xpose.msk.msra.mxu1 %vm46_vm0, %v41_v1  ;;  %v45_v4 = vrot.slane %v42_v3, 1  ;;  %v43_v5 = vld [vmem:[%s368_s0] sm:$0x3]  ;;  %36 = vst.msk [vmem:[#allocation2] sm:$0x3] %vm35_vm1, %v322_v6  ;;  %v99_v8 = vand.u32 127, %v98_v7 }
   0x9   :  { %244 = vmatpush.xpose.msk.msra.mxu0 %vm46_vm0, %v40_v2  ;;  %103 = vperm.xlu0 %257, %v43_v5   ;;  %v323_v16 = vmov 0.0   ;;  %vm140_vm5 = vcmask 64512   ;;  %vm38_vm6 = vcmask 254976   ;;  %s324_s0 = smov [#allocation8]   ;;  %s234_s24 = sshll.u32 %s371_s3, 4  ;;  %s235_s24 = int_to_ptr.hbm [resolvable:$true] %s234_s24 }
   0xa   :  { %158 = vmatpush.msra.mxu2 %v40_v2  ;;  %180 = vmatpush.msra.mxu3 %v41_v1  ;;  %37 = vst.msk [vmem:[#allocation3] sm:$0x3] %vm35_vm1, %v323_v16  ;;  %s232_s1 = sshll.u32 %s324_s0, 4  ;;  %s233_s1 = int_to_ptr.vmem [resolvable:$true] %s232_s1 }
   0xb   :  { %247 = vmatmul.msk.f32.vlgmr.msra.gmra.mxu1 %vm46_vm0, %v45_v4  ;;  %39 = vst.msk [vmem:[#allocation4] sm:$0x3] %vm38_vm6, %v323_v16 }
   0xc   :  { %245 = vmatmul.msk.f32.vlgmr.msra.gmra.mxu0 %vm46_vm0, %v42_v3 }
   0xf   :  { %v113_v17 = vld [vmem:[#allocation2] sm:$0x3] }
  0x11   :  { %v130_v29 = vld [vmem:[#allocation3] sm:$0x3] }
  0x12   :  { %v185_v37 = vld [vmem:[#allocation4] sm:$0x3] }
  0x7b   :  { %v104_v9 = vpop.permute.xlu0 %103 }
  0x7c   :  { %vm105_vm3 = vcmp.lt.s32.totalorder %v99_v8, %v104_v9 }
  0x88   :  { %v94_v10 = vpop.f32.mrf.mxu1 }
  0x89   :  { %v69_v11 = vpop.f32.mrf.mxu0  ;;  %v108_v12 = vrot.slane %v94_v10, 7 }
  0x8b   :  { %v110_v13 = vsel %vm109_vm2, %v108_v12, %v69_v11 }
  0x8c   :  { %v112_v14 = vsel %vm105_vm3, %v110_v13, -4.2949673e+09 }
  0x8d   :  { %v115_v15 = vsel %vm114_vm4, %v112_v14, -inf }
  0x8e   :  { %116 = vmax.xlane.f32.xlu0 %v115_v15 }
 0x101   :  { %v117_v18 = vpop.xlane.xlu0 %116 }
 0x102   :  { %v118_v19 = vmax.f32 %v113_v17, %v117_v18 }
 0x104   :  { %v119_v20 = vsub.f32 %v113_v17, %v118_v19  ;;  %200 = vst.msk [vmem:[#allocation2] sm:$0x3] %vm35_vm1, %v118_v19  ;;  %124 = vperm.xlu1 %258, %v118_v19  }
 0x106   :  { %v120_v27 = vmul.f32 1.442695, %v119_v20 }
 0x176   :  { %v125_v21 = vpop.permute.xlu1 %124 }
 0x177   :  { %v127_v22 = vsub.f32 %v112_v14, %v125_v21 }
 0x179   :  { %v128_v23 = vmul.f32 1.442695, %v127_v22 }
 0x17b   :  { %260 = vpow2.f32 %v128_v23 }
 0x17c   :  { %262 = vpow2.f32 %v120_v27 }
 0x181   :  { %v261_v24 = vpop.eup %260 }
 0x182   :  { %248 = vmatmul.msk.f32.vlgmr.msra.gmra.mxu2 %vm140_vm5, %v261_v24  ;;  %v132_v25 = vsel %vm114_vm4, %v261_v24, 0.0  ;;  %v139_v26 = vrot.slane %v261_v24, 1  ;;  %v263_v28 = vpop.eup %262 }
 0x183   :  { %133 = vadd.xlane.f32.xlu1 %v132_v25  ;;  %v131_v30 = vmul.f32 %v263_v28, %v130_v29 }
 0x184   :  { %249 = vmatmul.msk.f32.vlgmr.msra.gmra.mxu3 %vm140_vm5, %v139_v26 }
 0x1f6   :  { %v134_v31 = vpop.xlane.xlu1 %133 }
 0x1f7   :  { %v135_v32 = vadd.f32 %v134_v31, %v131_v30 }
 0x1f9   :  { %137 = vst.msk [vmem:[#allocation3] sm:$0x3] %vm35_vm1, %v135_v32 }
 0x200   :  { %v205_v33 = vld [vmem:[#allocation3] sm:$0x3] }
 0x201   :  { %208 = vperm.xlu2 %259, %v205_v33  }
 0x205   :  { %v160_v41 = vpop.f32.mrf.mxu2 }
 0x207   :  { %v182_v35 = vpop.f32.mrf.mxu3 }
 0x208   :  { %v194_v36 = vrot.slane %v182_v35, 7 }
 0x209   :  { %188 = vperm.xlu2 %259, %v263_v28  }
 0x20a   :  { %v195_v44 = vsel %vm109_vm2, %v194_v36, %v160_v41 }
 0x25b   :  { %v209_v34 = vpop.permute.xlu2 %208 }
 0x25c   :  { %264 = vrcp.f32 %v209_v34  ;;  %v222_v48 = vand.u32 2147483648, %v209_v34  ;;  %vm216_vm8 = vweird.f32 %v209_v34  ;;  %v220_v49 = vand.u32 2147483647, %v209_v34 }
 0x25e   :  { %v223_v51 = vor.u32 1.1754944e-38, %v222_v48  ;;  %vm221_vm10 = vcmp.eq.f32.partialorder %v220_v49, 8.507059e+37 }
 0x262   :  { %v265_v38 = vpop.eup %264 }
 0x263   :  { %v212_v39 = vmul.f32 %v265_v38, %v209_v34  ;;  %v189_v40 = vpop.permute.xlu2 %188  ;;  %vm217_vm7 = vweird.f32 %v265_v38 }
 0x264   :  { %v191_v42 = vmul.f32 %v189_v40, %v185_v37  ;;  %vm218_vm9 = vmor %vm216_vm8, %vm217_vm7 }
 0x265   :  { %v213_v43 = vsub.f32 1.0, %v212_v39 }
 0x266   :  { %v197_v45 = vadd.f32 %v195_v44, %v191_v42 }
 0x267   :  { %v214_v46 = vmul.f32 %v265_v38, %v213_v43 }
 0x268   :  { %199 = vst.msk [vmem:[#allocation4] sm:$0x3] %vm38_vm6, %v197_v45 }
 0x269   :  { %v215_v47 = vadd.f32 %v265_v38, %v214_v46 }
 0x26b   :  { %v219_v50 = vsel %vm218_vm9, %v265_v38, %v215_v47 }
 0x26c   :  { %v224_v53 = vsel %vm221_vm10, %v223_v51, %v219_v50 }
 0x26f   :  { %v204_v52 = vld [vmem:[#allocation4] sm:$0x3] }
 0x270   :  { %v225_v54 = vmul.f32 %v224_v53, %v204_v52 }
 0x272   :  { %226 = vst.msk [vmem:[#allocation8] sm:$0x3] %vm38_vm6, %v225_v54 }
 0x273   :  { %237 = dma.vmem_to_hbm [thread:$0]  %s233_s1, 32, %s235_s24, [#allocation7]  }
 0x274   :  { %316 = dma.done.wait [#allocation7], 32  }
 0x275   :  { %317 = vsyncadd [#allocation7], 4294967264 }
 0x276   :  { %242 = vsyncpa [#allocation6], 1 }
 0x277   :  { %243 = vsyncpa [#allocation7], 1 }

</bundles_post_ra>
